<compile_context>
chip_gen: v7x
topology: tpu7x:2x2x1
jax: 0.10.0
libtpu: 0.0.40
codegen_flags: <defaults>
</compile_context>

<pallas_src>
import functools
import math

import jax
import jax.numpy as jnp
from jax.experimental import pallas as pl
from jax.experimental.pallas import tpu as pltpu

_VMEM_LIMIT = 48 * 1024 * 1024          # <= v7x 64 MiB physical, with headroom
_TILE_PREF = 512                        # ~85% of HBM roofline on streamed matmuls
_TILE_EFF = {128: 0.29, 256: 0.63, 384: 0.75, 512: 0.85}   # measured roofline fracs


# ---------------------------------------------------------------------------
# Tile / padding planning: pad every matmul dim so a big MXU tile divides it.
# ---------------------------------------------------------------------------
def _round_up(x, m):
    return ((x + m - 1) // m) * m


def _plan_dim(d, pref=_TILE_PREF):
    """Return (padded_dim, tile): padded so the chosen tile always divides it."""
    d = max(int(d), 1)
    d128 = _round_up(d, 128)
    if d128 <= pref:
        return d128, d128                       # single full-width block
    best = None
    for t, eff in _TILE_EFF.items():
        if t > pref:
            continue
        padded = _round_up(d128, t)
        score = padded / eff                    # ~time ∝ padded work / tile efficiency
        if best is None or score < best[0]:
            best = (score, padded, t)
    return best[1], best[2]


def _tile_for(padded, pref=_TILE_PREF):
    """Largest tile <= pref dividing an already-planned (padded) dimension."""
    if padded <= pref:
        return padded
    for t in sorted(_TILE_EFF, reverse=True):
        if t <= pref and padded % t == 0:
            return t
    return 128


def _plan_head_dim(heads, c, pref=_TILE_PREF):
    """Per-head channel padding cp so dp = heads*cp is lane- and tile-dense."""
    unit0 = 128 // math.gcd(heads, 128)
    cp0 = _round_up(c, unit0)
    if heads * cp0 <= pref:
        return cp0, heads * cp0, heads * cp0
    best = None
    for t, eff in _TILE_EFF.items():
        if t > pref:
            continue
        unit = t // math.gcd(heads, t)
        cp = _round_up(c, unit)
        dp = heads * cp
        score = dp / eff
        if best is None or score < best[0]:
            best = (score, cp, dp, t)
    return best[1], best[2], best[3]


def _split_rows_for_megacore(m, tm):
    """v7x has 2 TensorCores: ensure the 'parallel' row axis has >= 2 blocks."""
    if m // tm == 1 and tm % 256 == 0:
        return tm // 2
    return tm


# ---------------------------------------------------------------------------
# Kernels (all: f32 VMEM accumulator, reduction axis last, init/finalize pl.when)
# ---------------------------------------------------------------------------
def _mm_dual_kernel(a_ref, b_ref, o32_ref, o16_ref, acc_ref):
    """C = A @ B, emitted both as f32 (residual) and bf16 (next matmul operand)."""
    @pl.when(pl.program_id(2) == 0)
    def _init():
        acc_ref[...] = jnp.zeros_like(acc_ref)

    acc_ref[...] += jnp.dot(a_ref[...], b_ref[...],
                            preferred_element_type=jnp.float32)

    @pl.when(pl.program_id(2) == pl.num_programs(2) - 1)
    def _finalize():
        acc = acc_ref[...]
        o32_ref[...] = acc
        o16_ref[...] = acc.astype(jnp.bfloat16)


def _mm_rowscale_kernel(a_ref, b_ref, scale_ref, o_ref, acc_ref):
    """C = (A @ B) * scale, per-row f32 scale fused into the finalize."""
    @pl.when(pl.program_id(2) == 0)
    def _init():
        acc_ref[...] = jnp.zeros_like(acc_ref)

    acc_ref[...] += jnp.dot(a_ref[...], b_ref[...],
                            preferred_element_type=jnp.float32)

    @pl.when(pl.program_id(2) == pl.num_programs(2) - 1)
    def _finalize():
        o_ref[...] = acc_ref[...] * scale_ref[...]     # (tm,1) lane-broadcast


def _mm_attn_kernel(bt_ref, ew_ref, ez_ref, num_ref, z_ref, acc_ref, zacc_ref):
    """num = BT @ EW and z = BT @ EZ in a single pass over BT.

    The denominator matmul only runs on the first column block (j == 0) so the
    extra MXU work is 128/Dp of the main matmul instead of 128/tn.
    """
    j = pl.program_id(1)
    k = pl.program_id(2)
    k_last = pl.num_programs(2) - 1

    @pl.when(k == 0)
    def _init():
        acc_ref[...] = jnp.zeros_like(acc_ref)

    acc_ref[...] += jnp.dot(bt_ref[...], ew_ref[...],
                            preferred_element_type=jnp.float32)

    @pl.when(k == k_last)
    def _finalize():
        num_ref[...] = acc_ref[...]

    @pl.when((j == 0) & (k == 0))
    def _z_init():
        zacc_ref[...] = jnp.zeros_like(zacc_ref)

    @pl.when(j == 0)
    def _z_acc():
        zacc_ref[...] += jnp.dot(bt_ref[...], ez_ref[...],
                                 preferred_element_type=jnp.float32)

    @pl.when((j == 0) & (k == k_last))
    def _z_fin():
        z_ref[...] = zacc_ref[...]


# ---------------------------------------------------------------------------
# pallas_call wrappers
# ---------------------------------------------------------------------------
def _mm_dual(a, b, tm, tn, tk):
    m, k = a.shape
    _, n = b.shape
    grid = (m // tm, n // tn, k // tk)
    return pl.pallas_call(
        _mm_dual_kernel,
        out_shape=(jax.ShapeDtypeStruct((m, n), jnp.float32),
                   jax.ShapeDtypeStruct((m, n), jnp.bfloat16)),
        grid_spec=pltpu.PrefetchScalarGridSpec(
            num_scalar_prefetch=0, grid=grid,
            in_specs=[pl.BlockSpec((tm, tk), lambda i, j, kk: (i, kk)),
                      pl.BlockSpec((tk, tn), lambda i, j, kk: (kk, j))],
            out_specs=(pl.BlockSpec((tm, tn), lambda i, j, kk: (i, j)),
                       pl.BlockSpec((tm, tn), lambda i, j, kk: (i, j))),
            scratch_shapes=[pltpu.VMEM((tm, tn), jnp.float32)]),
        compiler_params=pltpu.CompilerParams(
            dimension_semantics=("parallel", "parallel", "arbitrary"),
            vmem_limit_bytes=_VMEM_LIMIT),
    )(a, b)


def _mm_rowscale(a, b, scale, tm, tn, tk):
    m, k = a.shape
    _, n = b.shape
    grid = (m // tm, n // tn, k // tk)
    return pl.pallas_call(
        _mm_rowscale_kernel,
        out_shape=jax.ShapeDtypeStruct((m, n), jnp.float32),
        grid_spec=pltpu.PrefetchScalarGridSpec(
            num_scalar_prefetch=0, grid=grid,
            in_specs=[pl.BlockSpec((tm, tk), lambda i, j, kk: (i, kk)),
                      pl.BlockSpec((tk, tn), lambda i, j, kk: (kk, j)),
                      pl.BlockSpec((tm, 1), lambda i, j, kk: (i, 0))],
            out_specs=pl.BlockSpec((tm, tn), lambda i, j, kk: (i, j)),
            scratch_shapes=[pltpu.VMEM((tm, tn), jnp.float32)]),
        compiler_params=pltpu.CompilerParams(
            dimension_semantics=("parallel", "parallel", "arbitrary"),
            vmem_limit_bytes=_VMEM_LIMIT),
    )(a, b, scale)


def _mm_attn(bt, ew, ez, tm, tn, tk):
    m, k = bt.shape
    _, n = ew.shape
    grid = (m // tm, n // tn, k // tk)
    return pl.pallas_call(
        _mm_attn_kernel,
        out_shape=(jax.ShapeDtypeStruct((m, n), jnp.float32),
                   jax.ShapeDtypeStruct((m, 128), jnp.float32)),
        grid_spec=pltpu.PrefetchScalarGridSpec(
            num_scalar_prefetch=0, grid=grid,
            in_specs=[pl.BlockSpec((tm, tk), lambda i, j, kk: (i, kk)),
                      pl.BlockSpec((tk, tn), lambda i, j, kk: (kk, j)),
                      pl.BlockSpec((tk, 128), lambda i, j, kk: (kk, 0))],
            out_specs=(pl.BlockSpec((tm, tn), lambda i, j, kk: (i, j)),
                       pl.BlockSpec((tm, 128), lambda i, j, kk: (i, 0))),
            scratch_shapes=[pltpu.VMEM((tm, tn), jnp.float32),
                            pltpu.VMEM((tm, 128), jnp.float32)]),
        compiler_params=pltpu.CompilerParams(
            # The z output ignores the column axis -> keep it "arbitrary" so
            # megacore only shards the (disjoint) row axis.
            dimension_semantics=("parallel", "arbitrary", "arbitrary"),
            vmem_limit_bytes=_VMEM_LIMIT),
    )(bt, ew, ez)


# ---------------------------------------------------------------------------
# Static-graph precompute: densify the incidence list once, reuse every call.
# ---------------------------------------------------------------------------
def build_incidence(vertex, edges, num_nodes, num_edges):
    """Returns (B, BT, deg_inv), padded so large MXU tiles always divide them.

    B       [Mp, Np] bf16  edge-by-vertex incidence multiplicities (exact ints)
    BT      [Np, Mp] bf16  pre-transposed copy (avoids an in-kernel transpose)
    deg_inv [Mp, 1]  f32   1 / max(#incidences per edge, 1)  (scatter-mean scale)
    """
    np_, _ = _plan_dim(num_nodes)
    mp_, _ = _plan_dim(num_edges)
    b = jnp.zeros((num_edges, num_nodes), jnp.float32).at[edges, vertex].add(1.0)
    if int(jnp.max(b)) > 256:
        raise ValueError("incidence multiplicity > 256 is not bf16-exact")
    deg_inv = 1.0 / jnp.maximum(jnp.sum(b, axis=1, keepdims=True), 1.0)
    b_pad = jnp.zeros((mp_, np_), jnp.float32).at[:num_edges, :num_nodes].set(b)
    deg_inv_pad = jnp.zeros((mp_, 1), jnp.float32).at[:num_edges].set(deg_inv)
    return (b_pad.astype(jnp.bfloat16),
            b_pad.T.astype(jnp.bfloat16),
            deg_inv_pad)


# ---------------------------------------------------------------------------
# UniGATConv forward.
# ---------------------------------------------------------------------------
@functools.partial(jax.jit,
                   static_argnames=("heads", "out_channels", "negative_slope"))
def unigat_forward(X, W, att_e, B, BT, deg_inv, *, heads, out_channels,
                   negative_slope=0.01):
    """
    X:      [N, C_in] f32 node features
    W:      [C_in, heads*out_channels] f32 (nn.Linear weight, pre-transposed)
    att_e:  [1, heads, out_channels] (or [heads, out_channels]) f32
    B/BT/deg_inv: from build_incidence(...)
    """
    n, c_in = X.shape
    h, c = heads, out_channels
    assert h <= 128, "heads must be <= 128 (denominator lane packing)"
    mp_, np_ = B.shape
    assert BT.shape == (np_, mp_) and np_ >= n

    cp, dp, t_d = _plan_head_dim(h, c)
    kp, t_k = _plan_dim(c_in)
    t_n = _tile_for(np_)
    t_m = _tile_for(mp_)

    # Lane-dense bf16 packing (padding already rounds every dim to its tile).
    x_p = (jnp.zeros((np_, kp), jnp.float32).at[:n, :c_in].set(X)
           .astype(jnp.bfloat16))
    w_p = (jnp.zeros((kp, h, cp), jnp.float32)
           .at[:c_in, :, :c].set(W.reshape(c_in, h, c))
           .reshape(kp, dp).astype(jnp.bfloat16))
    att_p = jnp.zeros((h, cp), jnp.float32).at[:, :c].set(att_e.reshape(h, c))

    # ---- phase 0: X0 = X @ W (dual f32/bf16 output, no separate cast pass) --
    xw32, xw16 = _mm_dual(x_p, w_p,
                          _split_rows_for_megacore(np_, t_n), t_d, t_k)

    # ---- phase 1: Xe = scatter-mean over each edge's vertices ----------------
    # B holds exact small-int counts (bf16-exact); deg_inv (f32) applied to the
    # f32 accumulator inside the kernel finalize.
    xe = _mm_rowscale(B, xw16, deg_inv,
                      _split_rows_for_megacore(mp_, t_m), t_d, t_n)   # [Mp,Dp] f32

    # ---- attention coefficients (cheap O(M*H) glue, fused by XLA) ------------
    xe3 = xe.reshape(mp_, h, cp)
    s = jnp.einsum("ehc,hc->eh", xe3, att_p)
    s = jax.nn.leaky_relu(s, negative_slope)
    # The per-vertex softmax is invariant to any per-head constant shift, so we
    # shift by the global per-head max over VALID edges (padded rows masked out).
    # TODO(synk): extreme (>~80) per-head logit spread can still underflow exp()
    #             for low-logit vertices; an exact per-vertex max needs scatters.
    edge_valid = deg_inv > 0.0                                       # [Mp,1]
    s_max = jnp.max(jnp.where(edge_valid, s, -jnp.inf), axis=0, keepdims=True)
    e_exp = jnp.where(edge_valid, jnp.exp(s - s_max), 0.0)           # [Mp,H] f32
    ew = (xe3 * e_exp[:, :, None]).reshape(mp_, dp).astype(jnp.bfloat16)
    ez = (jnp.zeros((mp_, 128), jnp.float32).at[:, :h].set(e_exp)
          .astype(jnp.bfloat16))                       # lane-dense denominators

    # ---- phase 2: numerators + softmax denominators in one BT pass -----------
    num, zfull = _mm_attn(BT, ew, ez,
                          _split_rows_for_megacore(np_, t_n), t_d, t_m)

    num3 = num.reshape(np_, h, cp)
    z3 = zfull[:, :h][:, :, None]                                    # [Np,H,1]
    xv3 = jnp.where(z3 > 0.0, num3 / jnp.maximum(z3, 1e-30), 0.0)    # isolated -> 0
    out3 = xv3 + xw32.reshape(np_, h, cp)                            # residual add
    return out3[:n, :, :c].reshape(n, h * c)


# ---------------------------------------------------------------------------
# Pure-JAX reference mirroring the PyTorch module (for the sanity check).
# ---------------------------------------------------------------------------
def reference_forward(X, W, att_e, vertex, edges, num_edges, heads, out_channels,
                      negative_slope=0.01):
    n = X.shape[0]
    h, c = heads, out_channels
    x0 = X @ W                                                    # [N, H*C]
    xh = x0.reshape(n, h, c)
    xve = xh[vertex]                                              # [E, H, C]
    m = num_edges
    sums = jnp.zeros((m, h, c), x0.dtype).at[edges].add(xve)
    cnts = jnp.zeros((m,), x0.dtype).at[edges].add(1.0)
    xe = sums / jnp.maximum(cnts, 1.0)[:, None, None]             # scatter mean
    alpha_e = (xe * att_e.reshape(1, h, c)).sum(-1)               # [M, H]
    a_ev = alpha_e[edges]                                         # [E, H]
    alpha = jax.nn.leaky_relu(a_ev, negative_slope)
    vmax = jnp.full((n, h), -jnp.inf, x0.dtype).at[vertex].max(alpha)
    ex = jnp.exp(alpha - vmax[vertex])
    denom = jnp.zeros((n, h), x0.dtype).at[vertex].add(ex)
    alpha = ex / denom[vertex]                                    # softmax by vertex
    xev = xe[edges] * alpha[:, :, None]
    xv = jnp.zeros((n, h, c), x0.dtype).at[vertex].add(xev)
    return xv.reshape(n, h * c) + x0


if __name__ == "__main__":
    key = jax.random.PRNGKey(0)

    # Small shapes consistent with the module's forward.
    N = 16                  # number of vertices
    in_channels = 8
    heads = 2
    out_channels = 8
    D = heads * out_channels
    M = 8                   # number of hyperedges
    E = 32                  # number of incidences

    k_x, k_w, k_ae, k_v, k_e = jax.random.split(key, 5)
    X = jax.random.normal(k_x, (N, in_channels), dtype=jnp.float32)
    # nn.Linear(in_channels, heads*out_channels, bias=False): weight [D, C_in];
    # stored transposed as [C_in, D] so the kernel computes X @ W directly.
    bound = 1.0 / jnp.sqrt(in_channels)
    W = jax.random.uniform(k_w, (in_channels, D), minval=-bound, maxval=bound,
                           dtype=jnp.float32)
    # att_e as in the module ([1, H, C]); att_v exists but is unused in forward.
    att_e = jax.random.normal(k_ae, (1, heads, out_channels), jnp.float32) * 0.5
    vertex = jax.random.randint(k_v, (E,), 0, N, dtype=jnp.int32)
    edges = jax.random.randint(k_e, (E,), 0, M, dtype=jnp.int32)

    # Static-graph precompute, cached across forward calls.
    B, BT, deg_inv = build_incidence(vertex, edges, N, M)

    out = unigat_forward(X, W, att_e, B, BT, deg_inv,
                         heads=heads, out_channels=out_channels)
    out = jax.block_until_ready(out)

    ref = reference_forward(X, W, att_e, vertex, edges, M, heads, out_channels)
    assert out.shape == (N, D)
    err = float(jnp.max(jnp.abs(out - ref)))
    # bf16 operands on all three matmuls (f32 accumulation) -> ~1e-2 level
    # differences vs the pure-f32 reference.
    assert jnp.allclose(out, ref, atol=5e-2, rtol=5e-2), f"mismatch: max|diff|={err}"

    print("KERNEL_OK")
</pallas_src>

<mosaic_0001>
module attributes {stable_mosaic.version = 11 : i64} {
  func.func @_mm_dual_kernel(%arg0: i32, %arg1: i32, %arg2: i32, %arg3: memref<128x128xbf16, #tpu.memory_space<vmem>>, %arg4: memref<128x128xbf16, #tpu.memory_space<vmem>>, %arg5: memref<128x128xf32, #tpu.memory_space<vmem>>, %arg6: memref<128x128xbf16, #tpu.memory_space<vmem>>, %arg7: memref<128x128xf32, #tpu.memory_space<vmem>>) attributes {dimension_semantics = [#tpu.dimension_semantics<parallel>, #tpu.dimension_semantics<parallel>, #tpu.dimension_semantics<arbitrary>], iteration_bounds = array<i64: 1, 1, 1>, scalar_prefetch = 0 : i64, scratch_operands = 1 : i64, tpu.core_type = #tpu.core_type<tc>, window_params = [{transform_indices = @transform_0, window_bounds = array<i64: 128, 128>}, {transform_indices = @transform_1, window_bounds = array<i64: 128, 128>}, {transform_indices = @transform_2, window_bounds = array<i64: 128, 128>}, {transform_indices = @transform_3, window_bounds = array<i64: 128, 128>}]} {
    %c0_i32 = arith.constant 0 : i32
    %0 = arith.cmpi eq, %arg2, %c0_i32 : i32
    %1 = arith.extui %0 : i1 to i32
    %c0_i32_0 = arith.constant 0 : i32
    %2 = arith.cmpi ne, %1, %c0_i32_0 : i32
    scf.if %2 {
      %cst_10 = arith.constant 0.000000e+00 : f32
      %12 = vector.broadcast %cst_10 : f32 to vector<128x128xf32>
      %c0_11 = arith.constant 0 : index
      %c0_12 = arith.constant 0 : index
      %13 = vector.load %arg7[%c0_11, %c0_12] : memref<128x128xf32, #tpu.memory_space<vmem>>, vector<128x128xf32>
      tpu.vector_store %arg7[%c0_11, %c0_12], %12 {strides = array<i32>} : memref<128x128xf32, #tpu.memory_space<vmem>>, vector<128x128xf32>,
    } else {
    }
    %c0 = arith.constant 0 : index
    %c0_1 = arith.constant 0 : index
    %3 = vector.load %arg7[%c0, %c0_1] : memref<128x128xf32, #tpu.memory_space<vmem>>, vector<128x128xf32>
    %c0_2 = arith.constant 0 : index
    %c0_3 = arith.constant 0 : index
    %4 = vector.load %arg3[%c0_2, %c0_3] : memref<128x128xbf16, #tpu.memory_space<vmem>>, vector<128x128xbf16>
    %c0_4 = arith.constant 0 : index
    %c0_5 = arith.constant 0 : index
    %5 = vector.load %arg4[%c0_4, %c0_5] : memref<128x128xbf16, #tpu.memory_space<vmem>>, vector<128x128xbf16>
    %cst = arith.constant dense<0.000000e+00> : vector<128x128xf32>
    %6 = tpu.matmul %4, %5, %cst {dimension_numbers = #tpu.dot_dimension_numbers<[1], [0], [0], [1], [0, 0, 1, 1], [], []>} : vector<128x128xbf16>, vector<128x128xbf16>, vector<128x128xf32> -> vector<128x128xf32>
    %7 = arith.addf %3, %6 : vector<128x128xf32>
    %c0_6 = arith.constant 0 : index
    %c0_7 = arith.constant 0 : index
    %8 = vector.load %arg7[%c0_6, %c0_7] : memref<128x128xf32, #tpu.memory_space<vmem>>, vector<128x128xf32>
    tpu.vector_store %arg7[%c0_6, %c0_7], %7 {strides = array<i32>} : memref<128x128xf32, #tpu.memory_space<vmem>>, vector<128x128xf32>,
    %c0_i32_8 = arith.constant 0 : i32
    %9 = arith.cmpi eq, %arg2, %c0_i32_8 : i32
    %10 = arith.extui %9 : i1 to i32
    %c0_i32_9 = arith.constant 0 : i32
    %11 = arith.cmpi ne, %10, %c0_i32_9 : i32
    scf.if %11 {
      %c0_10 = arith.constant 0 : index
      %c0_11 = arith.constant 0 : index
      %12 = vector.load %arg7[%c0_10, %c0_11] : memref<128x128xf32, #tpu.memory_space<vmem>>, vector<128x128xf32>
      %c0_12 = arith.constant 0 : index
      %c0_13 = arith.constant 0 : index
      %13 = vector.load %arg5[%c0_12, %c0_13] : memref<128x128xf32, #tpu.memory_space<vmem>>, vector<128x128xf32>
      tpu.vector_store %arg5[%c0_12, %c0_13], %12 {strides = array<i32>} : memref<128x128xf32, #tpu.memory_space<vmem>>, vector<128x128xf32>,
      %14 = arith.truncf %12 : vector<128x128xf32> to vector<128x128xbf16>
      %c0_14 = arith.constant 0 : index
      %c0_15 = arith.constant 0 : index
      %15 = vector.load %arg6[%c0_14, %c0_15] : memref<128x128xbf16, #tpu.memory_space<vmem>>, vector<128x128xbf16>
      tpu.vector_store %arg6[%c0_14, %c0_15], %14 {strides = array<i32>} : memref<128x128xbf16, #tpu.memory_space<vmem>>, vector<128x128xbf16>,
    } else {
    }
    return
  }
  func.func @transform_0(%arg0: i32, %arg1: i32, %arg2: i32) -> (i32, i32) {
    %c0_i32 = arith.constant 0 : i32
    return %arg0, %arg2 : i32, i32
  }
  func.func @transform_1(%arg0: i32, %arg1: i32, %arg2: i32) -> (i32, i32) {
    %c0_i32 = arith.constant 0 : i32
    return %arg2, %arg1 : i32, i32
  }
  func.func @transform_2(%arg0: i32, %arg1: i32, %arg2: i32) -> (i32, i32) {
    %c0_i32 = arith.constant 0 : i32
    return %arg0, %arg1 : i32, i32
  }
  func.func @transform_3(%arg0: i32, %arg1: i32, %arg2: i32) -> (i32, i32) {
    %c0_i32 = arith.constant 0 : i32
    return %arg0, %arg1 : i32, i32
  }
}

module attributes {stable_mosaic.version = 11 : i64} {
  func.func @_mm_rowscale_kernel(%arg0: i32, %arg1: i32, %arg2: i32, %arg3: memref<128x128xbf16, #tpu.memory_space<vmem>>, %arg4: memref<128x128xbf16, #tpu.memory_space<vmem>>, %arg5: memref<128x1xf32, #tpu.memory_space<vmem>>, %arg6: memref<128x128xf32, #tpu.memory_space<vmem>>, %arg7: memref<128x128xf32, #tpu.memory_space<vmem>>) attributes {dimension_semantics = [#tpu.dimension_semantics<parallel>, #tpu.dimension_semantics<parallel>, #tpu.dimension_semantics<arbitrary>], iteration_bounds = array<i64: 1, 1, 1>, scalar_prefetch = 0 : i64, scratch_operands = 1 : i64, tpu.core_type = #tpu.core_type<tc>, window_params = [{transform_indices = @transform_0, window_bounds = array<i64: 128, 128>}, {transform_indices = @transform_1, window_bounds = array<i64: 128, 128>}, {transform_indices = @transform_2, window_bounds = array<i64: 128, 1>}, {transform_indices = @transform_3, window_bounds = array<i64: 128, 128>}]} {
    %c0_i32 = arith.constant 0 : i32
    %0 = arith.cmpi eq, %arg2, %c0_i32 : i32
    %1 = arith.extui %0 : i1 to i32
    %c0_i32_0 = arith.constant 0 : i32
    %2 = arith.cmpi ne, %1, %c0_i32_0 : i32
    scf.if %2 {
      %cst_10 = arith.constant 0.000000e+00 : f32
      %12 = vector.broadcast %cst_10 : f32 to vector<128x128xf32>
      %c0_11 = arith.constant 0 : index
      %c0_12 = arith.constant 0 : index
      %13 = vector.load %arg7[%c0_11, %c0_12] : memref<128x128xf32, #tpu.memory_space<vmem>>, vector<128x128xf32>
      tpu.vector_store %arg7[%c0_11, %c0_12], %12 {strides = array<i32>} : memref<128x128xf32, #tpu.memory_space<vmem>>, vector<128x128xf32>,
    } else {
    }
    %c0 = arith.constant 0 : index
    %c0_1 = arith.constant 0 : index
    %3 = vector.load %arg7[%c0, %c0_1] : memref<128x128xf32, #tpu.memory_space<vmem>>, vector<128x128xf32>
    %c0_2 = arith.constant 0 : index
    %c0_3 = arith.constant 0 : index
    %4 = vector.load %arg3[%c0_2, %c0_3] : memref<128x128xbf16, #tpu.memory_space<vmem>>, vector<128x128xbf16>
    %c0_4 = arith.constant 0 : index
    %c0_5 = arith.constant 0 : index
    %5 = vector.load %arg4[%c0_4, %c0_5] : memref<128x128xbf16, #tpu.memory_space<vmem>>, vector<128x128xbf16>
    %cst = arith.constant dense<0.000000e+00> : vector<128x128xf32>
    %6 = tpu.matmul %4, %5, %cst {dimension_numbers = #tpu.dot_dimension_numbers<[1], [0], [0], [1], [0, 0, 1, 1], [], []>} : vector<128x128xbf16>, vector<128x128xbf16>, vector<128x128xf32> -> vector<128x128xf32>
    %7 = arith.addf %3, %6 : vector<128x128xf32>
    %c0_6 = arith.constant 0 : index
    %c0_7 = arith.constant 0 : index
    %8 = vector.load %arg7[%c0_6, %c0_7] : memref<128x128xf32, #tpu.memory_space<vmem>>, vector<128x128xf32>
    tpu.vector_store %arg7[%c0_6, %c0_7], %7 {strides = array<i32>} : memref<128x128xf32, #tpu.memory_space<vmem>>, vector<128x128xf32>,
    %c0_i32_8 = arith.constant 0 : i32
    %9 = arith.cmpi eq, %arg2, %c0_i32_8 : i32
    %10 = arith.extui %9 : i1 to i32
    %c0_i32_9 = arith.constant 0 : i32
    %11 = arith.cmpi ne, %10, %c0_i32_9 : i32
    scf.if %11 {
      %c0_10 = arith.constant 0 : index
      %c0_11 = arith.constant 0 : index
      %12 = vector.load %arg7[%c0_10, %c0_11] : memref<128x128xf32, #tpu.memory_space<vmem>>, vector<128x128xf32>
      %c0_12 = arith.constant 0 : index
      %c0_13 = arith.constant 0 : index
      %13 = vector.load %arg5[%c0_12, %c0_13] : memref<128x1xf32, #tpu.memory_space<vmem>>, vector<128x1xf32>
      %14 = vector.broadcast %13 : vector<128x1xf32> to vector<128x128xf32>
      %15 = arith.mulf %12, %14 : vector<128x128xf32>
      %c0_14 = arith.constant 0 : index
      %c0_15 = arith.constant 0 : index
      %16 = vector.load %arg6[%c0_14, %c0_15] : memref<128x128xf32, #tpu.memory_space<vmem>>, vector<128x128xf32>
      tpu.vector_store %arg6[%c0_14, %c0_15], %15 {strides = array<i32>} : memref<128x128xf32, #tpu.memory_space<vmem>>, vector<128x128xf32>,
    } else {
    }
    return
  }
  func.func @transform_0(%arg0: i32, %arg1: i32, %arg2: i32) -> (i32, i32) {
    %c0_i32 = arith.constant 0 : i32
    return %arg0, %arg2 : i32, i32
  }
  func.func @transform_1(%arg0: i32, %arg1: i32, %arg2: i32) -> (i32, i32) {
    %c0_i32 = arith.constant 0 : i32
    return %arg2, %arg1 : i32, i32
  }
  func.func @transform_2(%arg0: i32, %arg1: i32, %arg2: i32) -> (i32, i32) {
    %c0_i32 = arith.constant 0 : i32
    %c0_i32_0 = arith.constant 0 : i32
    return %arg0, %c0_i32 : i32, i32
  }
  func.func @transform_3(%arg0: i32, %arg1: i32, %arg2: i32) -> (i32, i32) {
    %c0_i32 = arith.constant 0 : i32
    return %arg0, %arg1 : i32, i32
  }
}

module attributes {stable_mosaic.version = 11 : i64} {
  func.func @_mm_attn_kernel(%arg0: i32, %arg1: i32, %arg2: i32, %arg3: memref<128x128xbf16, #tpu.memory_space<vmem>>, %arg4: memref<128x128xbf16, #tpu.memory_space<vmem>>, %arg5: memref<128x128xbf16, #tpu.memory_space<vmem>>, %arg6: memref<128x128xf32, #tpu.memory_space<vmem>>, %arg7: memref<128x128xf32, #tpu.memory_space<vmem>>, %arg8: memref<128x128xf32, #tpu.memory_space<vmem>>, %arg9: memref<128x128xf32, #tpu.memory_space<vmem>>) attributes {dimension_semantics = [#tpu.dimension_semantics<parallel>, #tpu.dimension_semantics<arbitrary>, #tpu.dimension_semantics<arbitrary>], iteration_bounds = array<i64: 1, 1, 1>, scalar_prefetch = 0 : i64, scratch_operands = 2 : i64, tpu.core_type = #tpu.core_type<tc>, window_params = [{transform_indices = @transform_0, window_bounds = array<i64: 128, 128>}, {transform_indices = @transform_1, window_bounds = array<i64: 128, 128>}, {transform_indices = @transform_2, window_bounds = array<i64: 128, 128>}, {transform_indices = @transform_3, window_bounds = array<i64: 128, 128>}, {transform_indices = @transform_4, window_bounds = array<i64: 128, 128>}]} {
    %c0_i32 = arith.constant 0 : i32
    %0 = arith.cmpi eq, %arg2, %c0_i32 : i32
    %1 = arith.extui %0 : i1 to i32
    %c0_i32_0 = arith.constant 0 : i32
    %2 = arith.cmpi ne, %1, %c0_i32_0 : i32
    scf.if %2 {
      %cst_18 = arith.constant 0.000000e+00 : f32
      %25 = vector.broadcast %cst_18 : f32 to vector<128x128xf32>
      %c0_19 = arith.constant 0 : index
      %c0_20 = arith.constant 0 : index
      %26 = vector.load %arg8[%c0_19, %c0_20] : memref<128x128xf32, #tpu.memory_space<vmem>>, vector<128x128xf32>
      tpu.vector_store %arg8[%c0_19, %c0_20], %25 {strides = array<i32>} : memref<128x128xf32, #tpu.memory_space<vmem>>, vector<128x128xf32>,
    } else {
    }
    %c0 = arith.constant 0 : index
    %c0_1 = arith.constant 0 : index
    %3 = vector.load %arg8[%c0, %c0_1] : memref<128x128xf32, #tpu.memory_space<vmem>>, vector<128x128xf32>
    %c0_2 = arith.constant 0 : index
    %c0_3 = arith.constant 0 : index
    %4 = vector.load %arg3[%c0_2, %c0_3] : memref<128x128xbf16, #tpu.memory_space<vmem>>, vector<128x128xbf16>
    %c0_4 = arith.constant 0 : index
    %c0_5 = arith.constant 0 : index
    %5 = vector.load %arg4[%c0_4, %c0_5] : memref<128x128xbf16, #tpu.memory_space<vmem>>, vector<128x128xbf16>
    %cst = arith.constant dense<0.000000e+00> : vector<128x128xf32>
    %6 = tpu.matmul %4, %5, %cst {dimension_numbers = #tpu.dot_dimension_numbers<[1], [0], [0], [1], [0, 0, 1, 1], [], []>} : vector<128x128xbf16>, vector<128x128xbf16>, vector<128x128xf32> -> vector<128x128xf32>
    %7 = arith.addf %3, %6 : vector<128x128xf32>
    %c0_6 = arith.constant 0 : index
    %c0_7 = arith.constant 0 : index
    %8 = vector.load %arg8[%c0_6, %c0_7] : memref<128x128xf32, #tpu.memory_space<vmem>>, vector<128x128xf32>
    tpu.vector_store %arg8[%c0_6, %c0_7], %7 {strides = array<i32>} : memref<128x128xf32, #tpu.memory_space<vmem>>, vector<128x128xf32>,
    %c0_i32_8 = arith.constant 0 : i32
    %9 = arith.cmpi eq, %arg2, %c0_i32_8 : i32
    %10 = arith.extui %9 : i1 to i32
    %c0_i32_9 = arith.constant 0 : i32
    %11 = arith.cmpi ne, %10, %c0_i32_9 : i32
    scf.if %11 {
      %c0_18 = arith.constant 0 : index
      %c0_19 = arith.constant 0 : index
      %25 = vector.load %arg8[%c0_18, %c0_19] : memref<128x128xf32, #tpu.memory_space<vmem>>, vector<128x128xf32>
      %c0_20 = arith.constant 0 : index
      %c0_21 = arith.constant 0 : index
      %26 = vector.load %arg6[%c0_20, %c0_21] : memref<128x128xf32, #tpu.memory_space<vmem>>, vector<128x128xf32>
      tpu.vector_store %arg6[%c0_20, %c0_21], %25 {strides = array<i32>} : memref<128x128xf32, #tpu.memory_space<vmem>>, vector<128x128xf32>,
    } else {
    }
    %c0_i32_10 = arith.constant 0 : i32
    %12 = arith.cmpi eq, %arg1, %c0_i32_10 : i32
    %c0_i32_11 = arith.constant 0 : i32
    %13 = arith.cmpi eq, %arg2, %c0_i32_11 : i32
    %14 = arith.andi %12, %13 : i1
    %15 = arith.extui %14 : i1 to i32
    %c0_i32_12 = arith.constant 0 : i32
    %16 = arith.cmpi ne, %15, %c0_i32_12 : i32
    scf.if %16 {
      %cst_18 = arith.constant 0.000000e+00 : f32
      %25 = vector.broadcast %cst_18 : f32 to vector<128x128xf32>
      %c0_19 = arith.constant 0 : index
      %c0_20 = arith.constant 0 : index
      %26 = vector.load %arg9[%c0_19, %c0_20] : memref<128x128xf32, #tpu.memory_space<vmem>>, vector<128x128xf32>
      tpu.vector_store %arg9[%c0_19, %c0_20], %25 {strides = array<i32>} : memref<128x128xf32, #tpu.memory_space<vmem>>, vector<128x128xf32>,
    } else {
    }
    %c0_i32_13 = arith.constant 0 : i32
    %17 = arith.cmpi eq, %arg1, %c0_i32_13 : i32
    %18 = arith.extui %17 : i1 to i32
    %c0_i32_14 = arith.constant 0 : i32
    %19 = arith.cmpi ne, %18, %c0_i32_14 : i32
    scf.if %19 {
      %c0_18 = arith.constant 0 : index
      %c0_19 = arith.constant 0 : index
      %25 = vector.load %arg9[%c0_18, %c0_19] : memref<128x128xf32, #tpu.memory_space<vmem>>, vector<128x128xf32>
      %c0_20 = arith.constant 0 : index
      %c0_21 = arith.constant 0 : index
      %26 = vector.load %arg3[%c0_20, %c0_21] : memref<128x128xbf16, #tpu.memory_space<vmem>>, vector<128x128xbf16>
      %c0_22 = arith.constant 0 : index
      %c0_23 = arith.constant 0 : index
      %27 = vector.load %arg5[%c0_22, %c0_23] : memref<128x128xbf16, #tpu.memory_space<vmem>>, vector<128x128xbf16>
      %cst_24 = arith.constant dense<0.000000e+00> : vector<128x128xf32>
      %28 = tpu.matmul %26, %27, %cst_24 {dimension_numbers = #tpu.dot_dimension_numbers<[1], [0], [0], [1], [0, 0, 1, 1], [], []>} : vector<128x128xbf16>, vector<128x128xbf16>, vector<128x128xf32> -> vector<128x128xf32>
      %29 = arith.addf %25, %28 : vector<128x128xf32>
      %c0_25 = arith.constant 0 : index
      %c0_26 = arith.constant 0 : index
      %30 = vector.load %arg9[%c0_25, %c0_26] : memref<128x128xf32, #tpu.memory_space<vmem>>, vector<128x128xf32>
      tpu.vector_store %arg9[%c0_25, %c0_26], %29 {strides = array<i32>} : memref<128x128xf32, #tpu.memory_space<vmem>>, vector<128x128xf32>,
    } else {
    }
    %c0_i32_15 = arith.constant 0 : i32
    %20 = arith.cmpi eq, %arg1, %c0_i32_15 : i32
    %c0_i32_16 = arith.constant 0 : i32
    %21 = arith.cmpi eq, %arg2, %c0_i32_16 : i32
    %22 = arith.andi %20, %21 : i1
    %23 = arith.extui %22 : i1 to i32
    %c0_i32_17 = arith.constant 0 : i32
    %24 = arith.cmpi ne, %23, %c0_i32_17 : i32
    scf.if %24 {
      %c0_18 = arith.constant 0 : index
      %c0_19 = arith.constant 0 : index
      %25 = vector.load %arg9[%c0_18, %c0_19] : memref<128x128xf32, #tpu.memory_space<vmem>>, vector<128x128xf32>
      %c0_20 = arith.constant 0 : index
      %c0_21 = arith.constant 0 : index
      %26 = vector.load %arg7[%c0_20, %c0_21] : memref<128x128xf32, #tpu.memory_space<vmem>>, vector<128x128xf32>
      tpu.vector_store %arg7[%c0_20, %c0_21], %25 {strides = array<i32>} : memref<128x128xf32, #tpu.memory_space<vmem>>, vector<128x128xf32>,
    } else {
    }
    return
  }
  func.func @transform_0(%arg0: i32, %arg1: i32, %arg2: i32) -> (i32, i32) {
    %c0_i32 = arith.constant 0 : i32
    return %arg0, %arg2 : i32, i32
  }
  func.func @transform_1(%arg0: i32, %arg1: i32, %arg2: i32) -> (i32, i32) {
    %c0_i32 = arith.constant 0 : i32
    return %arg2, %arg1 : i32, i32
  }
  func.func @transform_2(%arg0: i32, %arg1: i32, %arg2: i32) -> (i32, i32) {
    %c0_i32 = arith.constant 0 : i32
    %c0_i32_0 = arith.constant 0 : i32
    return %arg2, %c0_i32 : i32, i32
  }
  func.func @transform_3(%arg0: i32, %arg1: i32, %arg2: i32) -> (i32, i32) {
    %c0_i32 = arith.constant 0 : i32
    return %arg0, %arg1 : i32, i32
  }
  func.func @transform_4(%arg0: i32, %arg1: i32, %arg2: i32) -> (i32, i32) {
    %c0_i32 = arith.constant 0 : i32
    %c0_i32_0 = arith.constant 0 : i32
    return %arg0, %c0_i32 : i32, i32
  }
}

</mosaic_0001>

<bundles_post_ra>
// kernel: unigat_forward.3
= control target key start
LH: loop header
LB: loop body
LE: loop exit
PB: predicated region body
PF: predicated region fallthrough
CT: control target
= control target key end

     0   :  { %s745_s1 = inlined_call_operand.vmem [shape: bf16[128,128], index: 1, kind: input, shape index: {}]   ;;  %s746_s0 = inlined_call_operand.vmem [shape: bf16[128,128], index: 0, kind: input, shape index: {}]   ;;  %s747_s2 = inlined_call_operand.vmem [shape: f32[128,128], index: 2, kind: output, shape index: {0}]   ;;  %s748_s3 = inlined_call_operand.vmem [shape: bf16[128,128], index: 3, kind: output, shape index: {1}]  }
   0x1   :  { %v589_v0 = vld [vmem:[%s745_s1] sm:$0xff]   ;;  %v590_v1 = vld [vmem:[%s745_s1 + $0x8] sm:$0xff]   ;;  %v591_v2 = vld [vmem:[%s745_s1 + $0x10] sm:$0xff]  }
   0x2   :  { %541 = vmatprep.subr.bf16.mxu0 %v589_v0  ;;  %573 = vmatprep.subr.bf16.mxu1 %v589_v0  ;;  %v592_v3 = vld [vmem:[%s745_s1 + $0x18] sm:$0xff]   ;;  %v597_v4 = vld [vmem:[%s746_s0] sm:$0xff]   ;;  %v594_v7 = vld [vmem:[%s745_s1 + $0x28] sm:$0xff]  }
   0x3   :  { %542 = vmatpush3.bf16.msra.mxu0 %v589_v0  ;;  %581 = vmatpush3.bf16.msra.mxu1 %v589_v0  ;;  %v598_v5 = vld [vmem:[%s746_s0 + $0x20] sm:$0xff]   ;;  %v595_v8 = vld [vmem:[%s745_s1 + $0x30] sm:$0xff]   ;;  %v596_v9 = vld [vmem:[%s745_s1 + $0x38] sm:$0xff]  }
   0x4   :  { %543 = vmatprep.subr.bf16.mxu0 %v590_v1  ;;  %574 = vmatprep.subr.bf16.mxu1 %v590_v1  ;;  %v593_v6 = vld [vmem:[%s745_s1 + $0x20] sm:$0xff]   ;;  %v599_v10 = vld [vmem:[%s746_s0 + $0x8] sm:$0xff]   ;;  %v601_v12 = vld [vmem:[%s746_s0 + $0x10] sm:$0xff]  }
   0x5   :  { %557 = vmatprep.mubr.bf16.mxu0 %v597_v4  ;;  %565 = vmatprep.mubr.bf16.mxu1 %v598_v5  ;;  %v600_v11 = vld [vmem:[%s746_s0 + $0x28] sm:$0xff]   ;;  %v602_v13 = vld [vmem:[%s746_s0 + $0x30] sm:$0xff]   ;;  %v603_v14 = vld [vmem:[%s746_s0 + $0x18] sm:$0xff]  }
   0x6   :  { %v604_v15 = vld [vmem:[%s746_s0 + $0x38] sm:$0xff]  }
   0x7   :  { %544 = vmatpush3.bf16.msra.mxu0 %v590_v1  ;;  %582 = vmatpush3.bf16.msra.mxu1 %v590_v1 }
   0x8   :  { %545 = vmatprep.subr.bf16.mxu0 %v591_v2  ;;  %575 = vmatprep.subr.bf16.mxu1 %v591_v2 }
   0xb   :  { %546 = vmatpush3.bf16.msra.mxu0 %v591_v2  ;;  %583 = vmatpush3.bf16.msra.mxu1 %v591_v2 }
   0xc   :  { %547 = vmatprep.subr.bf16.mxu0 %v592_v3  ;;  %576 = vmatprep.subr.bf16.mxu1 %v592_v3 }
   0xf   :  { %548 = vmatpush3.bf16.msra.mxu0 %v592_v3  ;;  %584 = vmatpush3.bf16.msra.mxu1 %v592_v3 }
  0x10   :  { %549 = vmatprep.subr.bf16.mxu0 %v593_v6  ;;  %577 = vmatprep.subr.bf16.mxu1 %v593_v6 }
  0x13   :  { %550 = vmatpush3.bf16.msra.mxu0 %v593_v6  ;;  %585 = vmatpush3.bf16.msra.mxu1 %v593_v6 }
  0x14   :  { %551 = vmatprep.subr.bf16.mxu0 %v594_v7  ;;  %578 = vmatprep.subr.bf16.mxu1 %v594_v7 }
  0x17   :  { %552 = vmatpush3.bf16.msra.mxu0 %v594_v7  ;;  %586 = vmatpush3.bf16.msra.mxu1 %v594_v7 }
  0x18   :  { %553 = vmatprep.subr.bf16.mxu0 %v595_v8  ;;  %579 = vmatprep.subr.bf16.mxu1 %v595_v8 }
  0x1b   :  { %554 = vmatpush3.bf16.msra.mxu0 %v595_v8  ;;  %587 = vmatpush3.bf16.msra.mxu1 %v595_v8 }
  0x1c   :  { %555 = vmatprep.subr.bf16.mxu0 %v596_v9  ;;  %580 = vmatprep.subr.bf16.mxu1 %v596_v9 }
  0x1f   :  { %556 = vmatpush3.bf16.msra.mxu0 %v596_v9  ;;  %588 = vmatpush3.bf16.msra.mxu1 %v596_v9 }
  0x22   :  { %558 = vmatmul.mubr.bf16.vlgmr.msra.gmra.mrb[0].mxu0 %v599_v10  ;;  %566 = vmatmul.mubr.bf16.vlgmr.msra.gmra.mrb[0].mxu1 %v600_v11 }
  0x23   :  { %561 = vmatprep.mubr.bf16.mxu0 %v601_v12  ;;  %569 = vmatprep.mubr.bf16.mxu1 %v602_v13 }
  0x2a   :  { %562 = vmatmul.mubr.bf16.gmra.mrb[4].mxu0 %v603_v14  ;;  %570 = vmatmul.mubr.bf16.gmra.mrb[4].mxu1 %v604_v15 }
  0xf5   :  { %v559_v16 = vpop.f32.mrb[0].mxu0  ;;  %v567_v17 = vpop.f32.mrb[0].mxu1 }
  0xf6   :  { %328 = vst [vmem:[%s747_s2 + $0x10] sm:$0xff] %v559_v16  ;;  %336 = vst [vmem:[%s747_s2 + $0x50] sm:$0xff] %v567_v17  ;;  %v212_v18 = vpop.f32.mrb[1].mxu0  ;;  %v244_v19 = vpop.f32.mrb[1].mxu1 }
  0xf7   :  { %326 = vst [vmem:[%s747_s2] sm:$0xff] %v212_v18  ;;  %334 = vst [vmem:[%s747_s2 + $0x40] sm:$0xff] %v244_v19  ;;  %v560_v20 = vpop.f32.mrb[2].mxu0  ;;  %v568_v21 = vpop.f32.mrb[2].mxu1 }
  0xf8   :  { %329 = vst [vmem:[%s747_s2 + $0x18] sm:$0xff] %v560_v20  ;;  %v486_v22 = vpack.c.bf16 %v560_v20, %v559_v16  ;;  %337 = vst [vmem:[%s747_s2 + $0x58] sm:$0xff] %v568_v21  ;;  %v506_v23 = vpack.c.bf16 %v568_v21, %v567_v17  ;;  %v215_v24 = vpop.f32.mrb[3].mxu0  ;;  %v247_v25 = vpop.f32.mrb[3].mxu1 }
  0xf9   :  { %327 = vst [vmem:[%s747_s2 + $0x8] sm:$0xff] %v215_v24  ;;  %v481_v26 = vpack.c.bf16 %v215_v24, %v212_v18  ;;  %335 = vst [vmem:[%s747_s2 + $0x48] sm:$0xff] %v247_v25  ;;  %v501_v27 = vpack.c.bf16 %v247_v25, %v244_v19 }
  0xfa   :  { %518 = vst [vmem:[%s748_s3 + $0x8] sm:$0xff] %v486_v22   ;;  %522 = vst [vmem:[%s748_s3 + $0x28] sm:$0xff] %v506_v23  }
  0xfb   :  { %482 = vst [vmem:[%s748_s3] sm:$0xff] %v481_v26   ;;  %521 = vst [vmem:[%s748_s3 + $0x20] sm:$0xff] %v501_v27  }
  0xfd   :  { %v563_v28 = vpop.f32.mrb[4].mxu0  ;;  %v571_v29 = vpop.f32.mrb[4].mxu1 }
  0xfe   :  { %332 = vst [vmem:[%s747_s2 + $0x30] sm:$0xff] %v563_v28  ;;  %340 = vst [vmem:[%s747_s2 + $0x70] sm:$0xff] %v571_v29  ;;  %v228_v30 = vpop.f32.mrb[5].mxu0  ;;  %v260_v31 = vpop.f32.mrb[5].mxu1 }
  0xff   :  { %330 = vst [vmem:[%s747_s2 + $0x20] sm:$0xff] %v228_v30  ;;  %338 = vst [vmem:[%s747_s2 + $0x60] sm:$0xff] %v260_v31  ;;  %v564_v32 = vpop.f32.mrb[6].mxu0  ;;  %v572_v33 = vpop.f32.mrb[6].mxu1 }
 0x100   :  { %333 = vst [vmem:[%s747_s2 + $0x38] sm:$0xff] %v564_v32  ;;  %v496_v34 = vpack.c.bf16 %v564_v32, %v563_v28  ;;  %341 = vst [vmem:[%s747_s2 + $0x78] sm:$0xff] %v572_v33  ;;  %v516_v35 = vpack.c.bf16 %v572_v33, %v571_v29  ;;  %v231_v36 = vpop.f32.mrb[7].mxu0  ;;  %v263_v37 = vpop.f32.mrb[7].mxu1 }
 0x101   :  { %331 = vst [vmem:[%s747_s2 + $0x28] sm:$0xff] %v231_v36  ;;  %v491_v38 = vpack.c.bf16 %v231_v36, %v228_v30  ;;  %339 = vst [vmem:[%s747_s2 + $0x68] sm:$0xff] %v263_v37  ;;  %v511_v39 = vpack.c.bf16 %v263_v37, %v260_v31 }
 0x102   :  { %520 = vst [vmem:[%s748_s3 + $0x18] sm:$0xff] %v496_v34   ;;  %524 = vst [vmem:[%s748_s3 + $0x38] sm:$0xff] %v516_v35  }
 0x103   :  { %519 = vst [vmem:[%s748_s3 + $0x10] sm:$0xff] %v491_v38   ;;  %523 = vst [vmem:[%s748_s3 + $0x30] sm:$0xff] %v511_v39  }

// kernel: unigat_forward.4
= control target key start
LH: loop header
LB: loop body
LE: loop exit
PB: predicated region body
PF: predicated region fallthrough
CT: control target
= control target key end

     0   :  { %v558_v1 = vmov 0   ;;  %s723_s1 = inlined_call_operand.vmem [shape: bf16[128,128], index: 1, kind: input, shape index: {}]   ;;  %s724_s0 = inlined_call_operand.vmem [shape: bf16[128,128], index: 0, kind: input, shape index: {}]   ;;  %s725_s2 = inlined_call_operand.vmem [shape: f32[128,1], index: 2, kind: input, shape index: {}]   ;;  %s726_s3 = inlined_call_operand.vmem [shape: f32[128,128], index: 3, kind: output, shape index: {}]  }
   0x1   :  { %v542_v0 = vld [vmem:[%s723_s1] sm:$0xff]   ;;  %541 = vset.pattern.permute.xlu1 %v558_v1  ;;  %540 = vset.pattern.permute.xlu0 %v558_v1  ;;  %v543_v2 = vld [vmem:[%s723_s1 + $0x8] sm:$0xff]   ;;  %v544_v3 = vld [vmem:[%s723_s1 + $0x10] sm:$0xff]  }
   0x2   :  { %491 = vmatprep.subr.bf16.mxu0 %v542_v0  ;;  %523 = vmatprep.subr.bf16.mxu1 %v542_v0  ;;  %v545_v4 = vld [vmem:[%s723_s1 + $0x18] sm:$0xff]   ;;  %v550_v5 = vld [vmem:[%s724_s0] sm:$0xff]   ;;  %v547_v8 = vld [vmem:[%s723_s1 + $0x28] sm:$0xff]  }
   0x3   :  { %492 = vmatpush3.bf16.msra.mxu0 %v542_v0  ;;  %531 = vmatpush3.bf16.msra.mxu1 %v542_v0  ;;  %v551_v6 = vld [vmem:[%s724_s0 + $0x20] sm:$0xff]   ;;  %v329_v9 = vld [vmem:[%s725_s2 + $0x10] sm:$0xff]  ;;  %v330_v11 = vld [vmem:[%s725_s2 + $0x18] sm:$0xff] }
   0x4   :  { %493 = vmatprep.subr.bf16.mxu0 %v543_v2  ;;  %524 = vmatprep.subr.bf16.mxu1 %v543_v2  ;;  %v546_v7 = vld [vmem:[%s723_s1 + $0x20] sm:$0xff]   ;;  %v328_v12 = vld [vmem:[%s725_s2 + $0x8] sm:$0xff]  ;;  %v548_v13 = vld [vmem:[%s723_s1 + $0x30] sm:$0xff]  }
   0x5   :  { %507 = vmatprep.mubr.bf16.mxu0 %v550_v5  ;;  %515 = vmatprep.mubr.bf16.mxu1 %v551_v6  ;;  %v327_v10 = vld [vmem:[%s725_s2] sm:$0xff]  ;;  %v332_v14 = vld [vmem:[%s725_s2 + $0x28] sm:$0xff]  ;;  %v549_v16 = vld [vmem:[%s723_s1 + $0x38] sm:$0xff]  }
   0x6   :  { %355 = vperm.xlu1 %541, %v329_v9   ;;  %345 = vperm.xlu0 %540, %v327_v10   ;;  %v331_v15 = vld [vmem:[%s725_s2 + $0x20] sm:$0xff]  ;;  %v334_v17 = vld [vmem:[%s725_s2 + $0x38] sm:$0xff]  ;;  %v333_v18 = vld [vmem:[%s725_s2 + $0x30] sm:$0xff] }
   0x7   :  { %494 = vmatpush3.bf16.msra.mxu0 %v543_v2  ;;  %532 = vmatpush3.bf16.msra.mxu1 %v543_v2  ;;  %v552_v19 = vld [vmem:[%s724_s0 + $0x8] sm:$0xff]   ;;  %v335_v22 = vld [vmem:[%s725_s2 + $0x40] sm:$0xff]  ;;  %v554_v23 = vld [vmem:[%s724_s0 + $0x10] sm:$0xff]  }
   0x8   :  { %495 = vmatprep.subr.bf16.mxu0 %v544_v3  ;;  %525 = vmatprep.subr.bf16.mxu1 %v544_v3  ;;  %v553_v20 = vld [vmem:[%s724_s0 + $0x28] sm:$0xff]   ;;  %v555_v24 = vld [vmem:[%s724_s0 + $0x30] sm:$0xff]   ;;  %v338_v25 = vld [vmem:[%s725_s2 + $0x58] sm:$0xff] }
   0x9   :  { %v336_v21 = vld [vmem:[%s725_s2 + $0x48] sm:$0xff]  ;;  %v337_v26 = vld [vmem:[%s725_s2 + $0x50] sm:$0xff]  ;;  %v556_v27 = vld [vmem:[%s724_s0 + $0x18] sm:$0xff]  }
   0xa   :  { %360 = vperm.xlu1 %541, %v330_v11   ;;  %350 = vperm.xlu0 %540, %v328_v12   ;;  %v557_v28 = vld [vmem:[%s724_s0 + $0x38] sm:$0xff]   ;;  %v340_v29 = vld [vmem:[%s725_s2 + $0x68] sm:$0xff]  ;;  %v339_v30 = vld [vmem:[%s725_s2 + $0x60] sm:$0xff] }
   0xb   :  { %496 = vmatpush3.bf16.msra.mxu0 %v544_v3  ;;  %533 = vmatpush3.bf16.msra.mxu1 %v544_v3  ;;  %v342_v31 = vld [vmem:[%s725_s2 + $0x78] sm:$0xff]  ;;  %v341_v32 = vld [vmem:[%s725_s2 + $0x70] sm:$0xff] }
   0xc   :  { %497 = vmatprep.subr.bf16.mxu0 %v545_v4  ;;  %526 = vmatprep.subr.bf16.mxu1 %v545_v4 }
   0xe   :  { %370 = vperm.xlu1 %541, %v332_v14   ;;  %365 = vperm.xlu0 %540, %v331_v15  }
   0xf   :  { %498 = vmatpush3.bf16.msra.mxu0 %v545_v4  ;;  %534 = vmatpush3.bf16.msra.mxu1 %v545_v4 }
  0x10   :  { %499 = vmatprep.subr.bf16.mxu0 %v546_v7  ;;  %527 = vmatprep.subr.bf16.mxu1 %v546_v7 }
  0x12   :  { %380 = vperm.xlu1 %541, %v334_v17   ;;  %375 = vperm.xlu0 %540, %v333_v18  }
  0x13   :  { %500 = vmatpush3.bf16.msra.mxu0 %v546_v7  ;;  %535 = vmatpush3.bf16.msra.mxu1 %v546_v7 }
  0x14   :  { %501 = vmatprep.subr.bf16.mxu0 %v547_v8  ;;  %528 = vmatprep.subr.bf16.mxu1 %v547_v8 }
  0x16   :  { %390 = vperm.xlu1 %541, %v336_v21   ;;  %385 = vperm.xlu0 %540, %v335_v22  }
  0x17   :  { %502 = vmatpush3.bf16.msra.mxu0 %v547_v8  ;;  %536 = vmatpush3.bf16.msra.mxu1 %v547_v8 }
  0x18   :  { %503 = vmatprep.subr.bf16.mxu0 %v548_v13  ;;  %529 = vmatprep.subr.bf16.mxu1 %v548_v13 }
  0x1a   :  { %400 = vperm.xlu1 %541, %v338_v25   ;;  %395 = vperm.xlu0 %540, %v337_v26  }
  0x1b   :  { %504 = vmatpush3.bf16.msra.mxu0 %v548_v13  ;;  %537 = vmatpush3.bf16.msra.mxu1 %v548_v13 }
  0x1c   :  { %505 = vmatprep.subr.bf16.mxu0 %v549_v16  ;;  %530 = vmatprep.subr.bf16.mxu1 %v549_v16 }
  0x1e   :  { %410 = vperm.xlu1 %541, %v340_v29   ;;  %405 = vperm.xlu0 %540, %v339_v30  }
  0x1f   :  { %506 = vmatpush3.bf16.msra.mxu0 %v549_v16  ;;  %538 = vmatpush3.bf16.msra.mxu1 %v549_v16 }
  0x22   :  { %508 = vmatmul.mubr.bf16.vlgmr.msra.gmra.mrb[0].mxu0 %v552_v19  ;;  %516 = vmatmul.mubr.bf16.vlgmr.msra.gmra.mrb[0].mxu1 %v553_v20 }
  0x23   :  { %511 = vmatprep.mubr.bf16.mxu0 %v554_v23  ;;  %519 = vmatprep.mubr.bf16.mxu1 %v555_v24 }
  0x24   :  { %420 = vperm.xlu1 %541, %v342_v31   ;;  %415 = vperm.xlu0 %540, %v341_v32  }
  0x2a   :  { %512 = vmatmul.mubr.bf16.gmra.mrb[4].mxu0 %v556_v27  ;;  %520 = vmatmul.mubr.bf16.gmra.mrb[4].mxu1 %v557_v28 }
  0x85   :  { %v356_v33 = vpop.permute.xlu1 %355  ;;  %v346_v34 = vpop.permute.xlu0 %345 }
  0x89   :  { %v361_v35 = vpop.permute.xlu1 %360  ;;  %v351_v36 = vpop.permute.xlu0 %350 }
  0x8d   :  { %v371_v37 = vpop.permute.xlu1 %370  ;;  %v366_v38 = vpop.permute.xlu0 %365 }
  0x91   :  { %v381_v39 = vpop.permute.xlu1 %380  ;;  %v376_v40 = vpop.permute.xlu0 %375 }
  0x95   :  { %v391_v41 = vpop.permute.xlu1 %390  ;;  %v386_v42 = vpop.permute.xlu0 %385 }
  0x99   :  { %v401_v43 = vpop.permute.xlu1 %400  ;;  %v396_v44 = vpop.permute.xlu0 %395 }
  0x9d   :  { %v411_v45 = vpop.permute.xlu1 %410  ;;  %v406_v46 = vpop.permute.xlu0 %405 }
  0xa3   :  { %v421_v63 = vpop.permute.xlu1 %420  ;;  %v416_v0 = vpop.permute.xlu0 %415 }
  0xf5   :  { %v509_v47 = vpop.f32.mrb[0].mxu0  ;;  %v517_v48 = vpop.f32.mrb[0].mxu1 }
  0xf6   :  { %v425_v49 = vmul.f32 %v509_v47, %v356_v33  ;;  %v433_v50 = vmul.f32 %v517_v48, %v396_v44  ;;  %v213_v51 = vpop.f32.mrb[1].mxu0  ;;  %v245_v52 = vpop.f32.mrb[1].mxu1 }
  0xf7   :  { %v423_v53 = vmul.f32 %v346_v34, %v213_v51  ;;  %v431_v54 = vmul.f32 %v386_v42, %v245_v52  ;;  %v510_v55 = vpop.f32.mrb[2].mxu0  ;;  %v518_v56 = vpop.f32.mrb[2].mxu1 }
  0xf8   :  { %441 = vst [vmem:[%s726_s3 + $0x10] sm:$0xff] %v425_v49  ;;  %449 = vst [vmem:[%s726_s3 + $0x50] sm:$0xff] %v433_v50  ;;  %v426_v57 = vmul.f32 %v510_v55, %v361_v35  ;;  %v434_v58 = vmul.f32 %v518_v56, %v401_v43  ;;  %v216_v59 = vpop.f32.mrb[3].mxu0  ;;  %v248_v60 = vpop.f32.mrb[3].mxu1 }
  0xf9   :  { %439 = vst [vmem:[%s726_s3] sm:$0xff] %v423_v53  ;;  %447 = vst [vmem:[%s726_s3 + $0x40] sm:$0xff] %v431_v54  ;;  %v424_v61 = vmul.f32 %v351_v36, %v216_v59  ;;  %v432_v62 = vmul.f32 %v391_v41, %v248_v60 }
  0xfa   :  { %442 = vst [vmem:[%s726_s3 + $0x18] sm:$0xff] %v426_v57  ;;  %450 = vst [vmem:[%s726_s3 + $0x58] sm:$0xff] %v434_v58 }
  0xfb   :  { %440 = vst [vmem:[%s726_s3 + $0x8] sm:$0xff] %v424_v61  ;;  %448 = vst [vmem:[%s726_s3 + $0x48] sm:$0xff] %v432_v62 }
  0xfd   :  { %v513_v1 = vpop.f32.mrb[4].mxu0  ;;  %v521_v2 = vpop.f32.mrb[4].mxu1 }
  0xfe   :  { %v429_v3 = vmul.f32 %v513_v1, %v376_v40  ;;  %v437_v4 = vmul.f32 %v521_v2, %v416_v0  ;;  %v229_v5 = vpop.f32.mrb[5].mxu0  ;;  %v261_v6 = vpop.f32.mrb[5].mxu1 }
  0xff   :  { %v427_v7 = vmul.f32 %v366_v38, %v229_v5  ;;  %v435_v8 = vmul.f32 %v406_v46, %v261_v6  ;;  %v514_v9 = vpop.f32.mrb[6].mxu0  ;;  %v522_v10 = vpop.f32.mrb[6].mxu1 }
 0x100   :  { %445 = vst [vmem:[%s726_s3 + $0x30] sm:$0xff] %v429_v3  ;;  %453 = vst [vmem:[%s726_s3 + $0x70] sm:$0xff] %v437_v4  ;;  %v430_v11 = vmul.f32 %v514_v9, %v381_v39  ;;  %v438_v12 = vmul.f32 %v522_v10, %v421_v63  ;;  %v232_v13 = vpop.f32.mrb[7].mxu0  ;;  %v264_v14 = vpop.f32.mrb[7].mxu1 }
 0x101   :  { %443 = vst [vmem:[%s726_s3 + $0x20] sm:$0xff] %v427_v7  ;;  %451 = vst [vmem:[%s726_s3 + $0x60] sm:$0xff] %v435_v8  ;;  %v428_v15 = vmul.f32 %v371_v37, %v232_v13  ;;  %v436_v16 = vmul.f32 %v411_v45, %v264_v14 }
 0x102   :  { %446 = vst [vmem:[%s726_s3 + $0x38] sm:$0xff] %v430_v11  ;;  %454 = vst [vmem:[%s726_s3 + $0x78] sm:$0xff] %v438_v12 }
 0x103   :  { %444 = vst [vmem:[%s726_s3 + $0x28] sm:$0xff] %v428_v15  ;;  %452 = vst [vmem:[%s726_s3 + $0x68] sm:$0xff] %v436_v16 }

// kernel: unigat_forward.5
= control target key start
LH: loop header
LB: loop body
LE: loop exit
PB: predicated region body
PF: predicated region fallthrough
CT: control target
= control target key end

     0   :  { %s1061_s1 = inlined_call_operand.vmem [shape: bf16[128,128], index: 1, kind: input, shape index: {}]   ;;  %s1062_s2 = inlined_call_operand.vmem [shape: bf16[128,128], index: 2, kind: input, shape index: {}]   ;;  %s1063_s0 = inlined_call_operand.vmem [shape: bf16[128,128], index: 0, kind: input, shape index: {}]   ;;  %s1064_s3 = inlined_call_operand.vmem [shape: f32[128,128], index: 3, kind: output, shape index: {0}]   ;;  %s1065_s4 = inlined_call_operand.vmem [shape: f32[128,128], index: 4, kind: output, shape index: {1}]  }
   0x1   :  { %v812_v0 = vld [vmem:[%s1061_s1] sm:$0xff]   ;;  %v814_v2 = vld [vmem:[%s1061_s1 + $0x8] sm:$0xff]   ;;  %v816_v4 = vld [vmem:[%s1061_s1 + $0x10] sm:$0xff]  }
   0x2   :  { %v813_v1 = vld [vmem:[%s1062_s2] sm:$0xff]   ;;  %748 = vmatprep.subr.bf16.mxu0 %v812_v0  ;;  %v815_v3 = vld [vmem:[%s1062_s2 + $0x8] sm:$0xff]   ;;  %v817_v5 = vld [vmem:[%s1062_s2 + $0x10] sm:$0xff]  }
   0x3   :  { %780 = vmatprep.subr.bf16.mxu1 %v813_v1  ;;  %749 = vmatpush3.bf16.msra.mxu0 %v812_v0  ;;  %v818_v6 = vld [vmem:[%s1061_s1 + $0x18] sm:$0xff]   ;;  %v820_v8 = vld [vmem:[%s1061_s1 + $0x20] sm:$0xff]   ;;  %v822_v10 = vld [vmem:[%s1061_s1 + $0x28] sm:$0xff]  }
   0x4   :  { %781 = vmatpush3.bf16.msra.mxu1 %v813_v1  ;;  %750 = vmatprep.subr.bf16.mxu0 %v814_v2  ;;  %v819_v7 = vld [vmem:[%s1062_s2 + $0x18] sm:$0xff]   ;;  %v821_v9 = vld [vmem:[%s1062_s2 + $0x20] sm:$0xff]   ;;  %v823_v11 = vld [vmem:[%s1062_s2 + $0x28] sm:$0xff]  }
   0x5   :  { %782 = vmatprep.subr.bf16.mxu1 %v815_v3  ;;  %v828_v12 = vld [vmem:[%s1063_s0] sm:$0xff]   ;;  %v824_v14 = vld [vmem:[%s1061_s1 + $0x30] sm:$0xff]   ;;  %v826_v16 = vld [vmem:[%s1061_s1 + $0x38] sm:$0xff]  }
   0x6   :  { %v829_v13 = vld [vmem:[%s1063_s0] sm:$0xff]   ;;  %764 = vmatprep.mubr.bf16.mxu0 %v828_v12  ;;  %v825_v15 = vld [vmem:[%s1062_s2 + $0x30] sm:$0xff]   ;;  %v827_v17 = vld [vmem:[%s1062_s2 + $0x38] sm:$0xff]  }
   0x7   :  { %751 = vmatpush3.bf16.msra.mxu0 %v814_v2  ;;  %796 = vmatprep.mubr.bf16.mxu1 %v829_v13  ;;  %v830_v18 = vld [vmem:[%s1063_s0 + $0x8] sm:$0xff]   ;;  %v832_v20 = vld [vmem:[%s1063_s0 + $0x10] sm:$0xff]   ;;  %v834_v22 = vld [vmem:[%s1063_s0 + $0x18] sm:$0xff]  }
   0x8   :  { %783 = vmatpush3.bf16.msra.mxu1 %v815_v3  ;;  %752 = vmatprep.subr.bf16.mxu0 %v816_v4  ;;  %v831_v19 = vld [vmem:[%s1063_s0 + $0x8] sm:$0xff]   ;;  %v833_v21 = vld [vmem:[%s1063_s0 + $0x10] sm:$0xff]   ;;  %v835_v23 = vld [vmem:[%s1063_s0 + $0x18] sm:$0xff]  }
   0x9   :  { %784 = vmatprep.subr.bf16.mxu1 %v817_v5  ;;  %v836_v24 = vld [vmem:[%s1063_s0 + $0x20] sm:$0xff]   ;;  %v838_v26 = vld [vmem:[%s1063_s0 + $0x28] sm:$0xff]   ;;  %v840_v28 = vld [vmem:[%s1063_s0 + $0x30] sm:$0xff]  }
   0xa   :  { %v837_v25 = vld [vmem:[%s1063_s0 + $0x20] sm:$0xff]   ;;  %v839_v27 = vld [vmem:[%s1063_s0 + $0x28] sm:$0xff]   ;;  %v841_v29 = vld [vmem:[%s1063_s0 + $0x30] sm:$0xff]  }
   0xb   :  { %753 = vmatpush3.bf16.msra.mxu0 %v816_v4  ;;  %v842_v30 = vld [vmem:[%s1063_s0 + $0x38] sm:$0xff]  }
   0xc   :  { %785 = vmatpush3.bf16.msra.mxu1 %v817_v5  ;;  %754 = vmatprep.subr.bf16.mxu0 %v818_v6  ;;  %v843_v31 = vld [vmem:[%s1063_s0 + $0x38] sm:$0xff]  }
   0xd   :  { %786 = vmatprep.subr.bf16.mxu1 %v819_v7 }
   0xf   :  { %755 = vmatpush3.bf16.msra.mxu0 %v818_v6 }
  0x10   :  { %787 = vmatpush3.bf16.msra.mxu1 %v819_v7  ;;  %756 = vmatprep.subr.bf16.mxu0 %v820_v8 }
  0x11   :  { %788 = vmatprep.subr.bf16.mxu1 %v821_v9 }
  0x13   :  { %757 = vmatpush3.bf16.msra.mxu0 %v820_v8 }
  0x14   :  { %789 = vmatpush3.bf16.msra.mxu1 %v821_v9  ;;  %758 = vmatprep.subr.bf16.mxu0 %v822_v10 }
  0x15   :  { %790 = vmatprep.subr.bf16.mxu1 %v823_v11 }
  0x17   :  { %759 = vmatpush3.bf16.msra.mxu0 %v822_v10 }
  0x18   :  { %791 = vmatpush3.bf16.msra.mxu1 %v823_v11  ;;  %760 = vmatprep.subr.bf16.mxu0 %v824_v14 }
  0x19   :  { %792 = vmatprep.subr.bf16.mxu1 %v825_v15 }
  0x1b   :  { %761 = vmatpush3.bf16.msra.mxu0 %v824_v14 }
  0x1c   :  { %793 = vmatpush3.bf16.msra.mxu1 %v825_v15  ;;  %762 = vmatprep.subr.bf16.mxu0 %v826_v16 }
  0x1d   :  { %794 = vmatprep.subr.bf16.mxu1 %v827_v17 }
  0x1f   :  { %763 = vmatpush3.bf16.msra.mxu0 %v826_v16 }
  0x20   :  { %795 = vmatpush3.bf16.msra.mxu1 %v827_v17 }
  0x22   :  { %765 = vmatmul.mubr.bf16.vlgmr.msra.gmra.mrb[0].mxu0 %v830_v18 }
  0x23   :  { %797 = vmatmul.mubr.bf16.vlgmr.msra.gmra.mrb[0].mxu1 %v831_v19  ;;  %768 = vmatprep.mubr.bf16.mxu0 %v832_v20 }
  0x24   :  { %800 = vmatprep.mubr.bf16.mxu1 %v833_v21 }
  0x2a   :  { %769 = vmatmul.mubr.bf16.gmra.mrb[4].mxu0 %v834_v22 }
  0x2b   :  { %801 = vmatmul.mubr.bf16.gmra.mrb[4].mxu1 %v835_v23  ;;  %772 = vmatprep.mubr.bf16.mxu0 %v836_v24 }
  0x2c   :  { %804 = vmatprep.mubr.bf16.mxu1 %v837_v25 }
  0x32   :  { %773 = vmatmul.mubr.bf16.gmra.mrb[8].mxu0 %v838_v26 }
  0x33   :  { %805 = vmatmul.mubr.bf16.gmra.mrb[8].mxu1 %v839_v27  ;;  %776 = vmatprep.mubr.bf16.mxu0 %v840_v28 }
  0x34   :  { %808 = vmatprep.mubr.bf16.mxu1 %v841_v29 }
  0x3a   :  { %777 = vmatmul.mubr.bf16.gmra.mrb[12].mxu0 %v842_v30 }
  0x3b   :  { %809 = vmatmul.mubr.bf16.gmra.mrb[12].mxu1 %v843_v31 }
  0xf5   :  { %v766_v32 = vpop.f32.mrb[0].mxu0 }
  0xf6   :  { %331 = vst [vmem:[%s1064_s3 + $0x10] sm:$0xff] %v766_v32  ;;  %v798_v33 = vpop.f32.mrb[0].mxu1  ;;  %v215_v34 = vpop.f32.mrb[1].mxu0 }
  0xf7   :  { %662 = vst [vmem:[%s1065_s4 + $0x10] sm:$0xff] %v798_v33  ;;  %329 = vst [vmem:[%s1064_s3] sm:$0xff] %v215_v34  ;;  %v547_v35 = vpop.f32.mrb[1].mxu1  ;;  %v767_v36 = vpop.f32.mrb[2].mxu0 }
  0xf8   :  { %660 = vst [vmem:[%s1065_s4] sm:$0xff] %v547_v35  ;;  %332 = vst [vmem:[%s1064_s3 + $0x18] sm:$0xff] %v767_v36  ;;  %v799_v37 = vpop.f32.mrb[2].mxu1  ;;  %v218_v38 = vpop.f32.mrb[3].mxu0 }
  0xf9   :  { %663 = vst [vmem:[%s1065_s4 + $0x18] sm:$0xff] %v799_v37  ;;  %330 = vst [vmem:[%s1064_s3 + $0x8] sm:$0xff] %v218_v38  ;;  %v550_v39 = vpop.f32.mrb[3].mxu1 }
  0xfa   :  { %661 = vst [vmem:[%s1065_s4 + $0x8] sm:$0xff] %v550_v39 }
  0xfd   :  { %v770_v40 = vpop.f32.mrb[4].mxu0 }
  0xfe   :  { %335 = vst [vmem:[%s1064_s3 + $0x30] sm:$0xff] %v770_v40  ;;  %v802_v41 = vpop.f32.mrb[4].mxu1  ;;  %v231_v42 = vpop.f32.mrb[5].mxu0 }
  0xff   :  { %666 = vst [vmem:[%s1065_s4 + $0x30] sm:$0xff] %v802_v41  ;;  %333 = vst [vmem:[%s1064_s3 + $0x20] sm:$0xff] %v231_v42  ;;  %v563_v43 = vpop.f32.mrb[5].mxu1  ;;  %v771_v44 = vpop.f32.mrb[6].mxu0 }
 0x100   :  { %664 = vst [vmem:[%s1065_s4 + $0x20] sm:$0xff] %v563_v43  ;;  %336 = vst [vmem:[%s1064_s3 + $0x38] sm:$0xff] %v771_v44  ;;  %v803_v45 = vpop.f32.mrb[6].mxu1  ;;  %v234_v46 = vpop.f32.mrb[7].mxu0 }
 0x101   :  { %667 = vst [vmem:[%s1065_s4 + $0x38] sm:$0xff] %v803_v45  ;;  %334 = vst [vmem:[%s1064_s3 + $0x28] sm:$0xff] %v234_v46  ;;  %v566_v47 = vpop.f32.mrb[7].mxu1 }
 0x102   :  { %665 = vst [vmem:[%s1065_s4 + $0x28] sm:$0xff] %v566_v47 }
 0x105   :  { %v774_v48 = vpop.f32.mrb[8].mxu0 }
 0x106   :  { %339 = vst [vmem:[%s1064_s3 + $0x50] sm:$0xff] %v774_v48  ;;  %v806_v49 = vpop.f32.mrb[8].mxu1  ;;  %v247_v50 = vpop.f32.mrb[9].mxu0 }
 0x107   :  { %670 = vst [vmem:[%s1065_s4 + $0x50] sm:$0xff] %v806_v49  ;;  %337 = vst [vmem:[%s1064_s3 + $0x40] sm:$0xff] %v247_v50  ;;  %v579_v51 = vpop.f32.mrb[9].mxu1  ;;  %v775_v52 = vpop.f32.mrb[10].mxu0 }
 0x108   :  { %668 = vst [vmem:[%s1065_s4 + $0x40] sm:$0xff] %v579_v51  ;;  %340 = vst [vmem:[%s1064_s3 + $0x58] sm:$0xff] %v775_v52  ;;  %v807_v53 = vpop.f32.mrb[10].mxu1  ;;  %v250_v54 = vpop.f32.mrb[11].mxu0 }
 0x109   :  { %671 = vst [vmem:[%s1065_s4 + $0x58] sm:$0xff] %v807_v53  ;;  %338 = vst [vmem:[%s1064_s3 + $0x48] sm:$0xff] %v250_v54  ;;  %v582_v55 = vpop.f32.mrb[11].mxu1 }
 0x10a   :  { %669 = vst [vmem:[%s1065_s4 + $0x48] sm:$0xff] %v582_v55 }
 0x10d   :  { %v778_v56 = vpop.f32.mrb[12].mxu0 }
 0x10e   :  { %343 = vst [vmem:[%s1064_s3 + $0x70] sm:$0xff] %v778_v56  ;;  %v810_v57 = vpop.f32.mrb[12].mxu1  ;;  %v263_v58 = vpop.f32.mrb[13].mxu0 }
 0x10f   :  { %674 = vst [vmem:[%s1065_s4 + $0x70] sm:$0xff] %v810_v57  ;;  %341 = vst [vmem:[%s1064_s3 + $0x60] sm:$0xff] %v263_v58  ;;  %v595_v59 = vpop.f32.mrb[13].mxu1  ;;  %v779_v60 = vpop.f32.mrb[14].mxu0 }
 0x110   :  { %672 = vst [vmem:[%s1065_s4 + $0x60] sm:$0xff] %v595_v59  ;;  %344 = vst [vmem:[%s1064_s3 + $0x78] sm:$0xff] %v779_v60  ;;  %v811_v61 = vpop.f32.mrb[14].mxu1  ;;  %v266_v62 = vpop.f32.mrb[15].mxu0 }
 0x111   :  { %675 = vst [vmem:[%s1065_s4 + $0x78] sm:$0xff] %v811_v61  ;;  %342 = vst [vmem:[%s1064_s3 + $0x68] sm:$0xff] %v266_v62  ;;  %v598_v63 = vpop.f32.mrb[15].mxu1 }
 0x112   :  { %673 = vst [vmem:[%s1065_s4 + $0x68] sm:$0xff] %v598_v63 }

</bundles_post_ra>
